<compile_context>
chip_gen: v7x
topology: tpu7x:2x2x1
jax: 0.10.0
libtpu: 0.0.40
codegen_flags: <defaults>
</compile_context>

<pallas_src>
import functools

import jax
import jax.numpy as jnp
from jax.experimental import pallas as pl
from jax.experimental.pallas import tpu as pltpu

EPS = 1e-5  # PyTorch InstanceNorm2d default


def _round_up(v, m):
    return (v + m - 1) // m * m


def _instance_norm_relu(h, inv_hw):
    """h: (C, HW) f32. Per-channel (sublane row) norm over the spatial lanes, then ReLU.

    Single-pass statistics: mean = s1/HW, var = s2/HW - mean^2 (biased, as in PyTorch).
    """
    s1 = jnp.sum(h, axis=-1, keepdims=True)                    # (C, 1)
    s2 = jnp.sum(h * h, axis=-1, keepdims=True)                # (C, 1)
    mean = s1 * inv_hw
    var = jnp.maximum(s2 * inv_hw - mean * mean, 0.0)          # clamp tiny cancellation
    return jnp.maximum((h - mean) * jax.lax.rsqrt(var + EPS), 0.0)


def _last_conv_block_kernel(x_ref, w_ref, o_ref, *, n_batch, c_out_p, inv_hw):
    """The whole problem in one kernel step (no grid).

    x_ref: (N, CP, HW)   channels on sublanes, flattened spatial on lanes (zero-padded chans)
    w_ref: (3, CP, CP)   zero-padded 1x1 conv weights, PyTorch (C_out, C_in) layout
    o_ref: (N, COP, HW)
    """
    w1 = w_ref[0]
    w2 = w_ref[1]
    w3 = w_ref[2]
    for n in range(n_batch):  # static unroll; N is tiny, no grid-step overhead
        x = x_ref[n].astype(jnp.float32)                                       # (CP, HW)
        h = _instance_norm_relu(
            jnp.dot(w1, x, preferred_element_type=jnp.float32), inv_hw)
        h = _instance_norm_relu(
            jnp.dot(w2, h, preferred_element_type=jnp.float32), inv_hw)
        h = _instance_norm_relu(
            jnp.dot(w3, h, preferred_element_type=jnp.float32), inv_hw)
        o_ref[n] = h[:c_out_p, :].astype(o_ref.dtype)           # sublane-tile-aligned store


def last_conv_block(x_nchw, w1, w2, w3):
    """LastConvBlock forward.

    x_nchw: (N, C_in, H, W) float32
    w1:     (4*C_in, C_in)   1x1 conv weight (PyTorch weight[:, :, 0, 0])
    w2:     (2*C_in, 4*C_in)
    w3:     (C_out, 2*C_in)
    returns (N, C_out, H, W) float32
    """
    N, C_in, H, W = x_nchw.shape
    HW = H * W
    C1, C2, C_out = w1.shape[0], w2.shape[0], w3.shape[0]

    # InstanceNorm statistics are taken over the (unpadded) lane axis; keep it 128-dense.
    assert HW % 128 == 0, "H*W must be a multiple of 128 for this layout"
    # TODO(synk): for arbitrary H*W, pad the lane axis and mask the padding out of the
    # InstanceNorm statistics (and switch to a two-pass HW-tiled variant if HW grows
    # large enough to pressure v7x's 64 MiB VMEM).

    CP = _round_up(max(C_in, C1, C2, C_out), 8)   # uniform padded channel width
    COP = _round_up(C_out, 8)                     # padded output channel width

    # Channels -> sublanes, flattened spatial -> lanes; zero-pad channels to CP.
    x_flat = x_nchw.reshape(N, C_in, HW).astype(jnp.float32)
    x_pad = jnp.pad(x_flat, ((0, 0), (0, CP - C_in), (0, 0)))

    # Pack the three tiny weight matrices into ONE zero-padded slab -> one DMA.
    # Zero rows/cols make the padded channels exactly zero through conv/IN/ReLU.
    w_slab = jnp.zeros((3, CP, CP), jnp.float32)
    w_slab = w_slab.at[0, :C1, :C_in].set(w1.astype(jnp.float32))
    w_slab = w_slab.at[1, :C2, :C1].set(w2.astype(jnp.float32))
    w_slab = w_slab.at[2, :C_out, :C2].set(w3.astype(jnp.float32))

    kernel = functools.partial(
        _last_conv_block_kernel, n_batch=N, c_out_p=COP, inv_hw=1.0 / HW)

    out = pl.pallas_call(
        kernel,
        out_shape=jax.ShapeDtypeStruct((N, COP, HW), jnp.float32),
        # No grid: whole (tiny) problem as a single step; per-step overhead would
        # otherwise rival total compute, and a 2-TC batch split loses at this size.
        in_specs=[
            pl.BlockSpec(memory_space=pltpu.MemorySpace.VMEM),   # x: one DMA
            pl.BlockSpec(memory_space=pltpu.MemorySpace.VMEM),   # packed weights: one DMA
        ],
        out_specs=pl.BlockSpec(memory_space=pltpu.MemorySpace.VMEM),
    )(x_pad, w_slab)

    return out[:, :C_out, :].reshape(N, C_out, H, W)


# ----------------------- pure-JAX reference (for verification) -----------------------
def _ref_layer(x_nchw, w):
    y = jnp.einsum("oc,nchw->nohw", w, x_nchw)
    mean = y.mean(axis=(2, 3), keepdims=True)
    var = ((y - mean) ** 2).mean(axis=(2, 3), keepdims=True)
    return jnp.maximum((y - mean) * jax.lax.rsqrt(var + EPS), 0.0)


def _ref_block(x_nchw, w1, w2, w3):
    x = _ref_layer(x_nchw, w1)
    x = _ref_layer(x, w2)
    x = _ref_layer(x, w3)
    return x


if __name__ == "__main__":
    key = jax.random.PRNGKey(0)
    N, C_in, H, W = 2, 4, 16, 16
    C_out = 4
    C1, C2 = C_in * 4, C_in * 2

    kx, k1, k2, k3 = jax.random.split(key, 4)
    x = jax.random.normal(kx, (N, C_in, H, W), dtype=jnp.float32)

    # Deterministic synthetic 1x1-conv weights, PyTorch (C_out, C_in) layout.
    w1 = jax.random.normal(k1, (C1, C_in), dtype=jnp.float32) * (1.0 / C_in) ** 0.5
    w2 = jax.random.normal(k2, (C2, C1), dtype=jnp.float32) * (1.0 / C1) ** 0.5
    w3 = jax.random.normal(k3, (C_out, C2), dtype=jnp.float32) * (1.0 / C2) ** 0.5

    out = jax.block_until_ready(last_conv_block(x, w1, w2, w3))
    ref = jax.block_until_ready(_ref_block(x, w1, w2, w3))

    assert out.shape == (N, C_out, H, W), out.shape
    max_err = float(jnp.max(jnp.abs(out - ref)))
    assert jnp.allclose(out, ref, atol=1e-4, rtol=1e-4), max_err

    print("KERNEL_OK")
</pallas_src>

<mosaic_0001>
module attributes {stable_mosaic.version = 11 : i64} {
  func.func @_last_conv_block_kernel(%arg0: memref<2x16x256xf32, #tpu.memory_space<vmem>>, %arg1: memref<3x16x16xf32, #tpu.memory_space<vmem>>, %arg2: memref<2x8x256xf32, #tpu.memory_space<vmem>>) attributes {dimension_semantics = [], scalar_prefetch = 0 : i64, scratch_operands = 0 : i64, tpu.core_type = #tpu.core_type<tc>} {
    %c0 = arith.constant 0 : index
    %c0_0 = arith.constant 0 : index
    %c0_1 = arith.constant 0 : index
    %0 = vector.load %arg1[%c0, %c0_0, %c0_1] : memref<3x16x16xf32, #tpu.memory_space<vmem>>, vector<1x16x16xf32>
    %1 = vector.shape_cast %0 : vector<1x16x16xf32> to vector<16x16xf32>
    %c1 = arith.constant 1 : index
    %c0_2 = arith.constant 0 : index
    %c0_3 = arith.constant 0 : index
    %2 = vector.load %arg1[%c1, %c0_2, %c0_3] : memref<3x16x16xf32, #tpu.memory_space<vmem>>, vector<1x16x16xf32>
    %3 = vector.shape_cast %2 : vector<1x16x16xf32> to vector<16x16xf32>
    %c2 = arith.constant 2 : index
    %c0_4 = arith.constant 0 : index
    %c0_5 = arith.constant 0 : index
    %4 = vector.load %arg1[%c2, %c0_4, %c0_5] : memref<3x16x16xf32, #tpu.memory_space<vmem>>, vector<1x16x16xf32>
    %5 = vector.shape_cast %4 : vector<1x16x16xf32> to vector<16x16xf32>
    %c0_6 = arith.constant 0 : index
    %c0_7 = arith.constant 0 : index
    %c0_8 = arith.constant 0 : index
    %6 = vector.load %arg0[%c0_6, %c0_7, %c0_8] : memref<2x16x256xf32, #tpu.memory_space<vmem>>, vector<1x16x256xf32>
    %7 = vector.shape_cast %6 : vector<1x16x256xf32> to vector<16x256xf32>
    %cst = arith.constant dense<0.000000e+00> : vector<16x256xf32>
    %8 = tpu.matmul %1, %7, %cst {dimension_numbers = #tpu.dot_dimension_numbers<[1], [0], [0], [1], [0, 0, 1, 1], [], []>} : vector<16x16xf32>, vector<16x256xf32>, vector<16x256xf32> -> vector<16x256xf32>
    %cst_9 = arith.constant dense<0.000000e+00> : vector<16xf32>
    %9 = vector.multi_reduction <add>, %8, %cst_9 [1] : vector<16x256xf32> to vector<16xf32>
    %10 = vector.shape_cast %9 : vector<16xf32> to vector<16x1xf32>
    %11 = arith.mulf %8, %8 : vector<16x256xf32>
    %cst_10 = arith.constant dense<0.000000e+00> : vector<16xf32>
    %12 = vector.multi_reduction <add>, %11, %cst_10 [1] : vector<16x256xf32> to vector<16xf32>
    %13 = vector.shape_cast %12 : vector<16xf32> to vector<16x1xf32>
    %cst_11 = arith.constant 3.906250e-03 : f32
    %14 = vector.broadcast %cst_11 : f32 to vector<16x1xf32>
    %15 = arith.mulf %10, %14 : vector<16x1xf32>
    %cst_12 = arith.constant 3.906250e-03 : f32
    %16 = vector.broadcast %cst_12 : f32 to vector<16x1xf32>
    %17 = arith.mulf %13, %16 : vector<16x1xf32>
    %18 = arith.mulf %15, %15 : vector<16x1xf32>
    %19 = arith.subf %17, %18 : vector<16x1xf32>
    %cst_13 = arith.constant 0.000000e+00 : f32
    %20 = vector.broadcast %cst_13 : f32 to vector<16x1xf32>
    %21 = arith.maximumf %19, %20 : vector<16x1xf32>
    %22 = vector.broadcast %15 : vector<16x1xf32> to vector<16x256xf32>
    %23 = arith.subf %8, %22 : vector<16x256xf32>
    %cst_14 = arith.constant 9.99999974E-6 : f32
    %24 = vector.broadcast %cst_14 : f32 to vector<16x1xf32>
    %25 = arith.addf %21, %24 : vector<16x1xf32>
    %26 = math.rsqrt %25 : vector<16x1xf32>
    %27 = vector.broadcast %26 : vector<16x1xf32> to vector<16x256xf32>
    %28 = arith.mulf %23, %27 : vector<16x256xf32>
    %cst_15 = arith.constant 0.000000e+00 : f32
    %29 = vector.broadcast %cst_15 : f32 to vector<16x256xf32>
    %30 = arith.maximumf %28, %29 : vector<16x256xf32>
    %cst_16 = arith.constant dense<0.000000e+00> : vector<16x256xf32>
    %31 = tpu.matmul %3, %30, %cst_16 {dimension_numbers = #tpu.dot_dimension_numbers<[1], [0], [0], [1], [0, 0, 1, 1], [], []>} : vector<16x16xf32>, vector<16x256xf32>, vector<16x256xf32> -> vector<16x256xf32>
    %cst_17 = arith.constant dense<0.000000e+00> : vector<16xf32>
    %32 = vector.multi_reduction <add>, %31, %cst_17 [1] : vector<16x256xf32> to vector<16xf32>
    %33 = vector.shape_cast %32 : vector<16xf32> to vector<16x1xf32>
    %34 = arith.mulf %31, %31 : vector<16x256xf32>
    %cst_18 = arith.constant dense<0.000000e+00> : vector<16xf32>
    %35 = vector.multi_reduction <add>, %34, %cst_18 [1] : vector<16x256xf32> to vector<16xf32>
    %36 = vector.shape_cast %35 : vector<16xf32> to vector<16x1xf32>
    %cst_19 = arith.constant 3.906250e-03 : f32
    %37 = vector.broadcast %cst_19 : f32 to vector<16x1xf32>
    %38 = arith.mulf %33, %37 : vector<16x1xf32>
    %cst_20 = arith.constant 3.906250e-03 : f32
    %39 = vector.broadcast %cst_20 : f32 to vector<16x1xf32>
    %40 = arith.mulf %36, %39 : vector<16x1xf32>
    %41 = arith.mulf %38, %38 : vector<16x1xf32>
    %42 = arith.subf %40, %41 : vector<16x1xf32>
    %cst_21 = arith.constant 0.000000e+00 : f32
    %43 = vector.broadcast %cst_21 : f32 to vector<16x1xf32>
    %44 = arith.maximumf %42, %43 : vector<16x1xf32>
    %45 = vector.broadcast %38 : vector<16x1xf32> to vector<16x256xf32>
    %46 = arith.subf %31, %45 : vector<16x256xf32>
    %cst_22 = arith.constant 9.99999974E-6 : f32
    %47 = vector.broadcast %cst_22 : f32 to vector<16x1xf32>
    %48 = arith.addf %44, %47 : vector<16x1xf32>
    %49 = math.rsqrt %48 : vector<16x1xf32>
    %50 = vector.broadcast %49 : vector<16x1xf32> to vector<16x256xf32>
    %51 = arith.mulf %46, %50 : vector<16x256xf32>
    %cst_23 = arith.constant 0.000000e+00 : f32
    %52 = vector.broadcast %cst_23 : f32 to vector<16x256xf32>
    %53 = arith.maximumf %51, %52 : vector<16x256xf32>
    %cst_24 = arith.constant dense<0.000000e+00> : vector<16x256xf32>
    %54 = tpu.matmul %5, %53, %cst_24 {dimension_numbers = #tpu.dot_dimension_numbers<[1], [0], [0], [1], [0, 0, 1, 1], [], []>} : vector<16x16xf32>, vector<16x256xf32>, vector<16x256xf32> -> vector<16x256xf32>
    %cst_25 = arith.constant dense<0.000000e+00> : vector<16xf32>
    %55 = vector.multi_reduction <add>, %54, %cst_25 [1] : vector<16x256xf32> to vector<16xf32>
    %56 = vector.shape_cast %55 : vector<16xf32> to vector<16x1xf32>
    %57 = arith.mulf %54, %54 : vector<16x256xf32>
    %cst_26 = arith.constant dense<0.000000e+00> : vector<16xf32>
    %58 = vector.multi_reduction <add>, %57, %cst_26 [1] : vector<16x256xf32> to vector<16xf32>
    %59 = vector.shape_cast %58 : vector<16xf32> to vector<16x1xf32>
    %cst_27 = arith.constant 3.906250e-03 : f32
    %60 = vector.broadcast %cst_27 : f32 to vector<16x1xf32>
    %61 = arith.mulf %56, %60 : vector<16x1xf32>
    %cst_28 = arith.constant 3.906250e-03 : f32
    %62 = vector.broadcast %cst_28 : f32 to vector<16x1xf32>
    %63 = arith.mulf %59, %62 : vector<16x1xf32>
    %64 = arith.mulf %61, %61 : vector<16x1xf32>
    %65 = arith.subf %63, %64 : vector<16x1xf32>
    %cst_29 = arith.constant 0.000000e+00 : f32
    %66 = vector.broadcast %cst_29 : f32 to vector<16x1xf32>
    %67 = arith.maximumf %65, %66 : vector<16x1xf32>
    %68 = vector.broadcast %61 : vector<16x1xf32> to vector<16x256xf32>
    %69 = arith.subf %54, %68 : vector<16x256xf32>
    %cst_30 = arith.constant 9.99999974E-6 : f32
    %70 = vector.broadcast %cst_30 : f32 to vector<16x1xf32>
    %71 = arith.addf %67, %70 : vector<16x1xf32>
    %72 = math.rsqrt %71 : vector<16x1xf32>
    %73 = vector.broadcast %72 : vector<16x1xf32> to vector<16x256xf32>
    %74 = arith.mulf %69, %73 : vector<16x256xf32>
    %cst_31 = arith.constant 0.000000e+00 : f32
    %75 = vector.broadcast %cst_31 : f32 to vector<16x256xf32>
    %76 = arith.maximumf %74, %75 : vector<16x256xf32>
    %77 = vector.extract_strided_slice %76 {offsets = [0, 0], sizes = [8, 256], strides = [1, 1]} : vector<16x256xf32> to vector<8x256xf32>
    %c0_32 = arith.constant 0 : index
    %c0_33 = arith.constant 0 : index
    %c0_34 = arith.constant 0 : index
    %78 = vector.load %arg2[%c0_32, %c0_33, %c0_34] : memref<2x8x256xf32, #tpu.memory_space<vmem>>, vector<1x8x256xf32>
    %79 = vector.shape_cast %78 : vector<1x8x256xf32> to vector<8x256xf32>
    %80 = vector.shape_cast %77 : vector<8x256xf32> to vector<1x8x256xf32>
    tpu.vector_store %arg2[%c0_32, %c0_33, %c0_34], %80 {strides = array<i32>} : memref<2x8x256xf32, #tpu.memory_space<vmem>>, vector<1x8x256xf32>,
    %c1_35 = arith.constant 1 : index
    %c0_36 = arith.constant 0 : index
    %c0_37 = arith.constant 0 : index
    %81 = vector.load %arg0[%c1_35, %c0_36, %c0_37] : memref<2x16x256xf32, #tpu.memory_space<vmem>>, vector<1x16x256xf32>
    %82 = vector.shape_cast %81 : vector<1x16x256xf32> to vector<16x256xf32>
    %cst_38 = arith.constant dense<0.000000e+00> : vector<16x256xf32>
    %83 = tpu.matmul %1, %82, %cst_38 {dimension_numbers = #tpu.dot_dimension_numbers<[1], [0], [0], [1], [0, 0, 1, 1], [], []>} : vector<16x16xf32>, vector<16x256xf32>, vector<16x256xf32> -> vector<16x256xf32>
    %cst_39 = arith.constant dense<0.000000e+00> : vector<16xf32>
    %84 = vector.multi_reduction <add>, %83, %cst_39 [1] : vector<16x256xf32> to vector<16xf32>
    %85 = vector.shape_cast %84 : vector<16xf32> to vector<16x1xf32>
    %86 = arith.mulf %83, %83 : vector<16x256xf32>
    %cst_40 = arith.constant dense<0.000000e+00> : vector<16xf32>
    %87 = vector.multi_reduction <add>, %86, %cst_40 [1] : vector<16x256xf32> to vector<16xf32>
    %88 = vector.shape_cast %87 : vector<16xf32> to vector<16x1xf32>
    %cst_41 = arith.constant 3.906250e-03 : f32
    %89 = vector.broadcast %cst_41 : f32 to vector<16x1xf32>
    %90 = arith.mulf %85, %89 : vector<16x1xf32>
    %cst_42 = arith.constant 3.906250e-03 : f32
    %91 = vector.broadcast %cst_42 : f32 to vector<16x1xf32>
    %92 = arith.mulf %88, %91 : vector<16x1xf32>
    %93 = arith.mulf %90, %90 : vector<16x1xf32>
    %94 = arith.subf %92, %93 : vector<16x1xf32>
    %cst_43 = arith.constant 0.000000e+00 : f32
    %95 = vector.broadcast %cst_43 : f32 to vector<16x1xf32>
    %96 = arith.maximumf %94, %95 : vector<16x1xf32>
    %97 = vector.broadcast %90 : vector<16x1xf32> to vector<16x256xf32>
    %98 = arith.subf %83, %97 : vector<16x256xf32>
    %cst_44 = arith.constant 9.99999974E-6 : f32
    %99 = vector.broadcast %cst_44 : f32 to vector<16x1xf32>
    %100 = arith.addf %96, %99 : vector<16x1xf32>
    %101 = math.rsqrt %100 : vector<16x1xf32>
    %102 = vector.broadcast %101 : vector<16x1xf32> to vector<16x256xf32>
    %103 = arith.mulf %98, %102 : vector<16x256xf32>
    %cst_45 = arith.constant 0.000000e+00 : f32
    %104 = vector.broadcast %cst_45 : f32 to vector<16x256xf32>
    %105 = arith.maximumf %103, %104 : vector<16x256xf32>
    %cst_46 = arith.constant dense<0.000000e+00> : vector<16x256xf32>
    %106 = tpu.matmul %3, %105, %cst_46 {dimension_numbers = #tpu.dot_dimension_numbers<[1], [0], [0], [1], [0, 0, 1, 1], [], []>} : vector<16x16xf32>, vector<16x256xf32>, vector<16x256xf32> -> vector<16x256xf32>
    %cst_47 = arith.constant dense<0.000000e+00> : vector<16xf32>
    %107 = vector.multi_reduction <add>, %106, %cst_47 [1] : vector<16x256xf32> to vector<16xf32>
    %108 = vector.shape_cast %107 : vector<16xf32> to vector<16x1xf32>
    %109 = arith.mulf %106, %106 : vector<16x256xf32>
    %cst_48 = arith.constant dense<0.000000e+00> : vector<16xf32>
    %110 = vector.multi_reduction <add>, %109, %cst_48 [1] : vector<16x256xf32> to vector<16xf32>
    %111 = vector.shape_cast %110 : vector<16xf32> to vector<16x1xf32>
    %cst_49 = arith.constant 3.906250e-03 : f32
    %112 = vector.broadcast %cst_49 : f32 to vector<16x1xf32>
    %113 = arith.mulf %108, %112 : vector<16x1xf32>
    %cst_50 = arith.constant 3.906250e-03 : f32
    %114 = vector.broadcast %cst_50 : f32 to vector<16x1xf32>
    %115 = arith.mulf %111, %114 : vector<16x1xf32>
    %116 = arith.mulf %113, %113 : vector<16x1xf32>
    %117 = arith.subf %115, %116 : vector<16x1xf32>
    %cst_51 = arith.constant 0.000000e+00 : f32
    %118 = vector.broadcast %cst_51 : f32 to vector<16x1xf32>
    %119 = arith.maximumf %117, %118 : vector<16x1xf32>
    %120 = vector.broadcast %113 : vector<16x1xf32> to vector<16x256xf32>
    %121 = arith.subf %106, %120 : vector<16x256xf32>
    %cst_52 = arith.constant 9.99999974E-6 : f32
    %122 = vector.broadcast %cst_52 : f32 to vector<16x1xf32>
    %123 = arith.addf %119, %122 : vector<16x1xf32>
    %124 = math.rsqrt %123 : vector<16x1xf32>
    %125 = vector.broadcast %124 : vector<16x1xf32> to vector<16x256xf32>
    %126 = arith.mulf %121, %125 : vector<16x256xf32>
    %cst_53 = arith.constant 0.000000e+00 : f32
    %127 = vector.broadcast %cst_53 : f32 to vector<16x256xf32>
    %128 = arith.maximumf %126, %127 : vector<16x256xf32>
    %cst_54 = arith.constant dense<0.000000e+00> : vector<16x256xf32>
    %129 = tpu.matmul %5, %128, %cst_54 {dimension_numbers = #tpu.dot_dimension_numbers<[1], [0], [0], [1], [0, 0, 1, 1], [], []>} : vector<16x16xf32>, vector<16x256xf32>, vector<16x256xf32> -> vector<16x256xf32>
    %cst_55 = arith.constant dense<0.000000e+00> : vector<16xf32>
    %130 = vector.multi_reduction <add>, %129, %cst_55 [1] : vector<16x256xf32> to vector<16xf32>
    %131 = vector.shape_cast %130 : vector<16xf32> to vector<16x1xf32>
    %132 = arith.mulf %129, %129 : vector<16x256xf32>
    %cst_56 = arith.constant dense<0.000000e+00> : vector<16xf32>
    %133 = vector.multi_reduction <add>, %132, %cst_56 [1] : vector<16x256xf32> to vector<16xf32>
    %134 = vector.shape_cast %133 : vector<16xf32> to vector<16x1xf32>
    %cst_57 = arith.constant 3.906250e-03 : f32
    %135 = vector.broadcast %cst_57 : f32 to vector<16x1xf32>
    %136 = arith.mulf %131, %135 : vector<16x1xf32>
    %cst_58 = arith.constant 3.906250e-03 : f32
    %137 = vector.broadcast %cst_58 : f32 to vector<16x1xf32>
    %138 = arith.mulf %134, %137 : vector<16x1xf32>
    %139 = arith.mulf %136, %136 : vector<16x1xf32>
    %140 = arith.subf %138, %139 : vector<16x1xf32>
    %cst_59 = arith.constant 0.000000e+00 : f32
    %141 = vector.broadcast %cst_59 : f32 to vector<16x1xf32>
    %142 = arith.maximumf %140, %141 : vector<16x1xf32>
    %143 = vector.broadcast %136 : vector<16x1xf32> to vector<16x256xf32>
    %144 = arith.subf %129, %143 : vector<16x256xf32>
    %cst_60 = arith.constant 9.99999974E-6 : f32
    %145 = vector.broadcast %cst_60 : f32 to vector<16x1xf32>
    %146 = arith.addf %142, %145 : vector<16x1xf32>
    %147 = math.rsqrt %146 : vector<16x1xf32>
    %148 = vector.broadcast %147 : vector<16x1xf32> to vector<16x256xf32>
    %149 = arith.mulf %144, %148 : vector<16x256xf32>
    %cst_61 = arith.constant 0.000000e+00 : f32
    %150 = vector.broadcast %cst_61 : f32 to vector<16x256xf32>
    %151 = arith.maximumf %149, %150 : vector<16x256xf32>
    %152 = vector.extract_strided_slice %151 {offsets = [0, 0], sizes = [8, 256], strides = [1, 1]} : vector<16x256xf32> to vector<8x256xf32>
    %c1_62 = arith.constant 1 : index
    %c0_63 = arith.constant 0 : index
    %c0_64 = arith.constant 0 : index
    %153 = vector.load %arg2[%c1_62, %c0_63, %c0_64] : memref<2x8x256xf32, #tpu.memory_space<vmem>>, vector<1x8x256xf32>
    %154 = vector.shape_cast %153 : vector<1x8x256xf32> to vector<8x256xf32>
    %155 = vector.shape_cast %152 : vector<8x256xf32> to vector<1x8x256xf32>
    tpu.vector_store %arg2[%c1_62, %c0_63, %c0_64], %155 {strides = array<i32>} : memref<2x8x256xf32, #tpu.memory_space<vmem>>, vector<1x8x256xf32>,
    return
  }
}

</mosaic_0001>

<bundles_post_ra>
// kernel: tpu_custom_call.1
= control target key start
LH: loop header
LB: loop body
LE: loop exit
PB: predicated region body
PF: predicated region fallthrough
CT: control target
= control target key end

     0   :  { %7 = vsyncpa [#allocation3], 0  ;;  %s1076_s0 = inlined_call_operand.hbm [shape: f32[2,16,256], index: 0, kind: input, shape index: {}]   ;;  %s1077_s1 = inlined_call_operand.hbm [shape: f32[3,16,16], index: 1, kind: input, shape index: {}]   ;;  %s1078_s2 = inlined_call_operand.hbm [shape: f32[2,8,256], index: 2, kind: output, shape index: {}]  }
   0x1   :  { %8 = vsyncpa [#allocation6], 0 }
   0x2   :  { %9 = vsyncpa [#allocation4], 0  ;;  %s903_s9 = smov [#allocation2]   ;;  %s831_s13 = scalar_lea.hbm %s1076_s0, 1024 }
   0x3   :  { %s15_s10 = sshll.u32 %s903_s9, 4  ;;  %p832_p0 = scmp.ne.s32.totalorder %s1076_s0, %s831_s13  ;;  %s16_s10 = int_to_ptr.vmem [resolvable:$true] %s15_s10 }
   0x4   :  { %p835_p1 = scmp.lt.u32.totalorder %s831_s13, %s1076_s0 }
   0x6   :  { %p837_p2 = pnand %p835_p1, %p832_p0 }
   0x8   :  { %840 = shalt.err (!%p837_p2)
}
   0x9   :  { %s841_s18 = scalar_lea.vmem %s16_s10, 1024  ;;  %p846_p4 = scmp.lt.s32.totalorder %s16_s10, %s16_s10 }
   0xa   :  { %p842_p3 = scmp.ne.s32.totalorder %s16_s10, %s841_s18  ;;  %p847_p5 = scmp.lt.s32.totalorder %s841_s18, %s841_s18 }
   0xc   :  { %p848_p6 = por %p847_p5, %p846_p4 }
   0xe   :  { %p849_p7 = pnand %p848_p6, %p842_p3 }
  0x10   :  { %852 = shalt.err (!%p849_p7)
}
  0x11   :  { %s904_s19 = smov 256   ;;  %s905_s20 = smov 16  }
  0x12   :  { %21 = dma.hbm_to_vmem [thread:$0]  %s1076_s0, 1024, %s16_s10, [#allocation3], %s904_s19, %s904_s19, %s905_s20  }
  0x13   :  { %s906_s23 = smov [#allocation5]   ;;  %s853_s27 = scalar_lea.hbm %s1077_s1, 768 }
  0x14   :  { %s27_s24 = sshll.u32 %s906_s23, 4  ;;  %p854_p8 = scmp.ne.s32.totalorder %s1077_s1, %s853_s27  ;;  %s28_s24 = int_to_ptr.vmem [resolvable:$true] %s27_s24 }
  0x15   :  { %p857_p9 = scmp.lt.u32.totalorder %s853_s27, %s1077_s1 }
  0x17   :  { %p859_p10 = pnand %p857_p9, %p854_p8 }
  0x19   :  { %862 = shalt.err (!%p859_p10)
}
  0x1a   :  { %s863_s4 = scalar_lea.vmem %s28_s24, 768  ;;  %p868_p12 = scmp.lt.s32.totalorder %s28_s24, %s28_s24 }
  0x1b   :  { %p864_p11 = scmp.ne.s32.totalorder %s28_s24, %s863_s4  ;;  %p869_p13 = scmp.lt.s32.totalorder %s863_s4, %s863_s4 }
  0x1d   :  { %p870_p0 = por %p869_p13, %p868_p12 }
  0x1f   :  { %p871_p1 = pnand %p870_p0, %p864_p11 }
  0x21   :  { %874 = shalt.err (!%p871_p1)
}
  0x22   :  { %s907_s0 = smov 128   ;;  %s908_s5 = smov 8  }
  0x23   :  { %33 = dma.hbm_to_vmem [thread:$0]  %s1077_s1, 768, %s28_s24, [#allocation6], %s907_s0, %s907_s0, %s908_s5  }
  0x24   :  { %897 = dma.done.wait [#allocation3], 1024  }
  0x25   :  { %898 = vsyncadd [#allocation3], 4294966272 }
  0x26   :  { %899 = dma.done.wait [#allocation6], 768  }
  0x27   :  { %900 = vsyncadd [#allocation6], 4294966528  ;;  %v909_v0 = vmov 0.0   ;;  %v49_v1 = vld [vmem:[#allocation2 + $0x8] sm:$0xff]  ;;  %v51_v2 = vld [vmem:[#allocation2 + $0x18] sm:$0xff]  ;;  %vm52_vm0 = vcmask 130048  }
  0x28   :  { %123 = vmatprep.mubr.f32.mxu0 %v909_v0  ;;  %248 = vmatprep.mubr.f32.mxu1 %v909_v0  ;;  %v48_v3 = vld [vmem:[#allocation2] sm:$0xff]  ;;  %v779_v4 = vpack.c.bf16 %v51_v2, %v49_v1  ;;  %v50_v5 = vld [vmem:[#allocation2 + $0x10] sm:$0xff]  ;;  %v960_v8 = vld [vmem:[#allocation5 + $0x8] sm:$0xff]  ;;  %s910_s1 = smov [#allocation7]  }
  0x29   :  { %v781_v6 = vpack.c.bf16 %v50_v5, %v48_v3  ;;  %v955_v7 = vld [vmem:[#allocation5] sm:$0xff]  ;;  %v409_v47 = vld [vmem:[#allocation2 + $0x28] sm:$0xff]  ;;  %v411_v48 = vld [vmem:[#allocation2 + $0x38] sm:$0xff]  ;;  %s754_s8 = sshll.u32 %s910_s1, 4  ;;  %s755_s8 = int_to_ptr.vmem [resolvable:$true] %s754_s8 }
  0x2a   :  { %780 = vmatprep.subr.bf16.mxu0 %v779_v4  ;;  %v791_v55 = vpack.c.bf16 %v411_v48, %v409_v47  ;;  %v408_v56 = vld [vmem:[#allocation2 + $0x20] sm:$0xff]  ;;  %v410_v57 = vld [vmem:[#allocation2 + $0x30] sm:$0xff]  ;;  %v970_v60 = vld [vmem:[#allocation5 + $0x18] sm:$0xff]  ;;  %s875_s9 = scalar_lea.vmem %s755_s8, 512  ;;  %p880_p3 = scmp.lt.s32.totalorder %s755_s8, %s755_s8 }
  0x2b   :  { %782 = vmatpush1.bf16.msra.mxu0 %v781_v6  ;;  %v965_v58 = vld [vmem:[#allocation5 + $0x10] sm:$0xff]  ;;  %v793_v59 = vpack.c.bf16 %v410_v57, %v408_v56  ;;  %p876_p2 = scmp.ne.s32.totalorder %s755_s8, %s875_s9  ;;  %p881_p4 = scmp.lt.s32.totalorder %s875_s9, %s875_s9 }
  0x2d   :  { %p882_p5 = por %p881_p4, %p880_p3 }
  0x2e   :  { %767 = vmatmul.mubr.msk.f32.vlgmr.msra.gmra.mrb[0].mxu0 %vm52_vm0, %v955_v7 }
  0x2f   :  { %129 = vmatprep.mubr.f32.mxu0 %v909_v0  ;;  %p883_p6 = pnand %p882_p5, %p876_p2 }
  0x32   :  { %768 = vmatmul.mubr.msk.f32.gmra.mrb[2].mxu0 %vm52_vm0, %v960_v8 }
  0x33   :  { %373 = vmatprep.mubr.f32.mxu0 %v909_v0 }
 0x101   :  { %v125_v9 = vpop.f32.mrb[0].mxu0 }
 0x102   :  { %v127_v10 = vpop.f32.mrb[1].mxu0  ;;  %v142_v11 = vmul.f32 %v125_v9, %v125_v9 }
 0x103   :  { %v136_v12 = vadd.f32 %v127_v10, %v125_v9  ;;  %v143_v13 = vmul.f32 %v127_v10, %v127_v10 }
 0x105   :  { %137 = vadd.xlane.f32.xlu0 %v136_v12  ;;  %v131_v14 = vpop.f32.mrb[2].mxu0  ;;  %v146_v15 = vadd.f32 %v143_v13, %v142_v11 }
 0x106   :  { %v133_v16 = vpop.f32.mrb[3].mxu0  ;;  %v144_v17 = vmul.f32 %v131_v14, %v131_v14 }
 0x107   :  { %147 = vadd.xlane.f32.xlu1 %v146_v15  ;;  %v139_v18 = vadd.f32 %v133_v16, %v131_v14  ;;  %v145_v19 = vmul.f32 %v133_v16, %v133_v16 }
 0x109   :  { %140 = vadd.xlane.f32.xlu0 %v139_v18  ;;  %v149_v20 = vadd.f32 %v145_v19, %v144_v17 }
 0x10b   :  { %150 = vadd.xlane.f32.xlu1 %v149_v20 }
 0x192   :  { %v138_v21 = vpop.xlane.xlu0 %137 }
 0x193   :  { %v152_v22 = vmul.f32 0.00390625, %v138_v21 }
 0x194   :  { %v148_v23 = vpop.xlane.xlu1 %147 }
 0x195   :  { %v154_v24 = vmul.f32 0.00390625, %v148_v23  ;;  %v156_v25 = vmul.f32 %v152_v22, %v152_v22  ;;  %v162_v38 = vsub.f32 %v125_v9, %v152_v22  ;;  %v163_v39 = vsub.f32 %v127_v10, %v152_v22 }
 0x196   :  { %v141_v26 = vpop.xlane.xlu0 %140 }
 0x197   :  { %v158_v27 = vsub.f32 %v154_v24, %v156_v25  ;;  %v153_v28 = vmul.f32 0.00390625, %v141_v26 }
 0x198   :  { %v151_v29 = vpop.xlane.xlu1 %150 }
 0x199   :  { %v160_v30 = vmax.f32 %v158_v27, 0.0  ;;  %v155_v31 = vmul.f32 0.00390625, %v151_v29  ;;  %v157_v32 = vmul.f32 %v153_v28, %v153_v28  ;;  %v164_v40 = vsub.f32 %v131_v14, %v153_v28 }
 0x19a   :  { %v165_v41 = vsub.f32 %v133_v16, %v153_v28 }
 0x19b   :  { %v166_v33 = vadd.f32 1e-05, %v160_v30  ;;  %v159_v34 = vsub.f32 %v155_v31, %v157_v32 }
 0x19d   :  { %811 = vrsqrt.f32 %v166_v33  ;;  %v161_v35 = vmax.f32 %v159_v34, 0.0 }
 0x19f   :  { %v167_v36 = vadd.f32 1e-05, %v161_v35 }
 0x1a1   :  { %813 = vrsqrt.f32 %v167_v36 }
 0x1a7   :  { %v812_v37 = vpop.eup %811 }
 0x1a8   :  { %v171_v42 = vmul.f32 %v812_v37, %v163_v39  ;;  %v170_v43 = vmul.f32 %v812_v37, %v162_v38 }
 0x1aa   :  { %v175_v49 = vmax.f32 %v171_v42, 0.0  ;;  %v174_v51 = vmax.f32 %v170_v43, 0.0 }
 0x1ab   :  { %v814_v44 = vpop.eup %813 }
 0x1ac   :  { %v173_v45 = vmul.f32 %v814_v44, %v165_v41  ;;  %v172_v46 = vmul.f32 %v814_v44, %v164_v40 }
 0x1ae   :  { %v177_v50 = vmax.f32 %v173_v45, 0.0  ;;  %v176_v52 = vmax.f32 %v172_v46, 0.0 }
 0x1b0   :  { %v783_v53 = vpack.c.bf16 %v177_v50, %v175_v49  ;;  %v785_v54 = vpack.c.bf16 %v176_v52, %v174_v51 }
 0x1b2   :  { %784 = vmatprep.subr.bf16.mxu1 %v783_v53 }
 0x1b3   :  { %786 = vmatpush1.bf16.msra.mxu1 %v785_v54 }
 0x1b4   :  { %792 = vmatprep.subr.bf16.mxu1 %v791_v55 }
 0x1b6   :  { %769 = vmatmul.mubr.msk.f32.vlgmr.msra.gmra.mrb[0].mxu1 %vm52_vm0, %v965_v58 }
 0x1b7   :  { %254 = vmatprep.mubr.f32.mxu1 %v909_v0  ;;  %794 = vmatpush1.bf16.msra.mxu1 %v793_v59 }
 0x1ba   :  { %770 = vmatmul.mubr.msk.f32.gmra.mrb[2].mxu1 %vm52_vm0, %v970_v60 }
 0x1bb   :  { %476 = vmatprep.mubr.f32.mxu1 %v909_v0 }
 0x1be   :  { %773 = vmatmul.mubr.msk.f32.vlgmr.msra.gmra.mrb[4].mxu1 %vm52_vm0, %v955_v7 }
 0x1bf   :  { %482 = vmatprep.mubr.f32.mxu1 %v909_v0 }
 0x1c2   :  { %774 = vmatmul.mubr.msk.f32.gmra.mrb[6].mxu1 %vm52_vm0, %v960_v8 }
 0x1c3   :  { %714 = vmatprep.mubr.f32.mxu1 %v909_v0 }
 0x289   :  { %v981_v61 = vpop.f32.mrb[0].mxu1 }
 0x28a   :  { %v983_v62 = vpop.f32.mrb[1].mxu1  ;;  %v267_v63 = vmul.f32 %v981_v61, %v981_v61 }
 0x28b   :  { %v261_v1 = vadd.f32 %v983_v62, %v981_v61  ;;  %v268_v2 = vmul.f32 %v983_v62, %v983_v62 }
 0x28d   :  { %262 = vadd.xlane.f32.xlu0 %v261_v1  ;;  %v991_v3 = vpop.f32.mrb[2].mxu1  ;;  %v271_v4 = vadd.f32 %v268_v2, %v267_v63 }
 0x28e   :  { %v993_v5 = vpop.f32.mrb[3].mxu1  ;;  %v269_v6 = vmul.f32 %v991_v3, %v991_v3 }
 0x28f   :  { %v264_v7 = vadd.f32 %v993_v5, %v991_v3  ;;  %v270_v8 = vmul.f32 %v993_v5, %v993_v5 }
 0x291   :  { %272 = vadd.xlane.f32.xlu0 %v271_v4  ;;  %v1001_v9 = vpop.f32.mrb[4].mxu1  ;;  %265 = vadd.xlane.f32.xlu1 %v264_v7  ;;  %v274_v10 = vadd.f32 %v270_v8, %v269_v6 }
 0x292   :  { %v1003_v11 = vpop.f32.mrb[5].mxu1  ;;  %v495_v12 = vmul.f32 %v1001_v9, %v1001_v9 }
 0x293   :  { %v489_v13 = vadd.f32 %v1003_v11, %v1001_v9  ;;  %v496_v14 = vmul.f32 %v1003_v11, %v1003_v11 }
 0x295   :  { %490 = vadd.xlane.f32.xlu0 %v489_v13  ;;  %v1011_v15 = vpop.f32.mrb[6].mxu1  ;;  %275 = vadd.xlane.f32.xlu1 %v274_v10  ;;  %v499_v16 = vadd.f32 %v496_v14, %v495_v12 }
 0x296   :  { %v1013_v17 = vpop.f32.mrb[7].mxu1  ;;  %v497_v18 = vmul.f32 %v1011_v15, %v1011_v15 }
 0x297   :  { %v492_v19 = vadd.f32 %v1013_v17, %v1011_v15  ;;  %v498_v20 = vmul.f32 %v1013_v17, %v1013_v17 }
 0x299   :  { %500 = vadd.xlane.f32.xlu0 %v499_v16  ;;  %493 = vadd.xlane.f32.xlu1 %v492_v19  ;;  %v502_v21 = vadd.f32 %v498_v20, %v497_v18 }
 0x29d   :  { %503 = vadd.xlane.f32.xlu1 %v502_v21  ;;  %v1029_v21 = vld [vmem:[#allocation5 + $0x20] sm:$0xff] }
 0x31a   :  { %v263_v22 = vpop.xlane.xlu0 %262 }
 0x31b   :  { %v277_v23 = vmul.f32 0.00390625, %v263_v22 }
 0x31d   :  { %v281_v26 = vmul.f32 %v277_v23, %v277_v23  ;;  %v287_v55 = vsub.f32 %v981_v61, %v277_v23  ;;  %v288_v56 = vsub.f32 %v983_v62, %v277_v23 }
 0x31e   :  { %v273_v24 = vpop.xlane.xlu0 %272  ;;  %v266_v25 = vpop.xlane.xlu1 %265 }
 0x31f   :  { %v279_v27 = vmul.f32 0.00390625, %v273_v24  ;;  %v278_v28 = vmul.f32 0.00390625, %v266_v25 }
 0x321   :  { %v283_v29 = vsub.f32 %v279_v27, %v281_v26  ;;  %v282_v34 = vmul.f32 %v278_v28, %v278_v28  ;;  %v289_v57 = vsub.f32 %v991_v3, %v278_v28  ;;  %v290_v59 = vsub.f32 %v993_v5, %v278_v28 }
 0x322   :  { %v491_v30 = vpop.xlane.xlu0 %490  ;;  %v276_v31 = vpop.xlane.xlu1 %275 }
 0x323   :  { %v285_v32 = vmax.f32 %v283_v29, 0.0  ;;  %v505_v33 = vmul.f32 0.00390625, %v491_v30  ;;  %v280_v35 = vmul.f32 0.00390625, %v276_v31 }
 0x325   :  { %v291_v36 = vadd.f32 1e-05, %v285_v32  ;;  %v284_v37 = vsub.f32 %v280_v35, %v282_v34  ;;  %v509_v38 = vmul.f32 %v505_v33, %v505_v33  ;;  %v515_v14 = vsub.f32 %v1001_v9, %v505_v33 }
 0x326   :  { %v501_v39 = vpop.xlane.xlu0 %500  ;;  %v494_v40 = vpop.xlane.xlu1 %493  ;;  %v516_v61 = vsub.f32 %v1003_v11, %v505_v33 }
 0x327   :  { %815 = vrsqrt.f32 %v291_v36  ;;  %v286_v41 = vmax.f32 %v284_v37, 0.0  ;;  %v507_v42 = vmul.f32 0.00390625, %v501_v39  ;;  %v506_v43 = vmul.f32 0.00390625, %v494_v40 }
 0x329   :  { %v292_v44 = vadd.f32 1e-05, %v286_v41  ;;  %v511_v45 = vsub.f32 %v507_v42, %v509_v38  ;;  %v510_v48 = vmul.f32 %v506_v43, %v506_v43  ;;  %v517_v3 = vsub.f32 %v1011_v15, %v506_v43  ;;  %v1034_v15 = vld [vmem:[#allocation5 + $0x28] sm:$0xff] }
 0x32a   :  { %v504_v46 = vpop.xlane.xlu1 %503  ;;  %v518_v5 = vsub.f32 %v1013_v17, %v506_v43 }
 0x32b   :  { %817 = vrsqrt.f32 %v292_v44  ;;  %v513_v47 = vmax.f32 %v511_v45, 0.0  ;;  %v508_v49 = vmul.f32 0.00390625, %v504_v46 }
 0x32d   :  { %v519_v50 = vadd.f32 1e-05, %v513_v47  ;;  %v512_v51 = vsub.f32 %v508_v49, %v510_v48 }
 0x32f   :  { %819 = vrsqrt.f32 %v519_v50  ;;  %v514_v52 = vmax.f32 %v512_v51, 0.0 }
 0x331   :  { %v816_v53 = vpop.eup %815  ;;  %v520_v54 = vadd.f32 1e-05, %v514_v52 }
 0x332   :  { %v296_v63 = vmul.f32 %v816_v53, %v288_v56  ;;  %v295_v1 = vmul.f32 %v816_v53, %v287_v55 }
 0x333   :  { %821 = vrsqrt.f32 %v520_v54 }
 0x334   :  { %v300_v7 = vmax.f32 %v296_v63, 0.0  ;;  %v299_v10 = vmax.f32 %v295_v1, 0.0 }
 0x335   :  { %v818_v2 = vpop.eup %817 }
 0x336   :  { %v298_v4 = vmul.f32 %v818_v2, %v290_v59  ;;  %v297_v6 = vmul.f32 %v818_v2, %v289_v57 }
 0x338   :  { %v302_v8 = vmax.f32 %v298_v4, 0.0  ;;  %v301_v12 = vmax.f32 %v297_v6, 0.0 }
 0x339   :  { %v820_v13 = vpop.eup %819 }
 0x33a   :  { %v787_v62 = vpack.c.bf16 %v302_v8, %v300_v7  ;;  %v789_v16 = vpack.c.bf16 %v301_v12, %v299_v10  ;;  %v524_v18 = vmul.f32 %v820_v13, %v516_v61  ;;  %v523_v19 = vmul.f32 %v820_v13, %v515_v14 }
 0x33c   :  { %788 = vmatprep.subr.bf16.mxu0 %v787_v62  ;;  %v528_v9 = vmax.f32 %v524_v18, 0.0  ;;  %v527_v24 = vmax.f32 %v523_v19, 0.0 }
 0x33d   :  { %v822_v20 = vpop.eup %821  ;;  %790 = vmatpush1.bf16.msra.mxu0 %v789_v16 }
 0x33e   :  { %v526_v22 = vmul.f32 %v822_v20, %v518_v5  ;;  %v525_v23 = vmul.f32 %v822_v20, %v517_v3 }
 0x340   :  { %771 = vmatmul.mubr.msk.f32.vlgmr.msra.gmra.mrb[4].mxu0 %vm52_vm0, %v1029_v21  ;;  %v530_v11 = vmax.f32 %v526_v22, 0.0  ;;  %v529_v25 = vmax.f32 %v525_v23, 0.0 }
 0x341   :  { %379 = vmatprep.mubr.f32.mxu0 %v909_v0 }
 0x342   :  { %v795_v17 = vpack.c.bf16 %v530_v11, %v528_v9  ;;  %v797_v26 = vpack.c.bf16 %v529_v25, %v527_v24 }
 0x344   :  { %772 = vmatmul.mubr.msk.f32.gmra.mrb[6].mxu0 %vm52_vm0, %v1034_v15  ;;  %796 = vmatprep.subr.bf16.mxu0 %v795_v17 }
 0x345   :  { %798 = vmatpush1.bf16.msra.mxu0 %v797_v26  ;;  %595 = vmatprep.mubr.f32.mxu0 %v909_v0 }
 0x348   :  { %775 = vmatmul.mubr.msk.f32.vlgmr.msra.gmra.mrb[8].mxu0 %vm52_vm0, %v965_v58 }
 0x349   :  { %601 = vmatprep.mubr.f32.mxu0 %v909_v0 }
 0x34c   :  { %776 = vmatmul.mubr.msk.f32.gmra.mrb[10].mxu0 %vm52_vm0, %v970_v60 }
 0x413   :  { %v1044_v27 = vpop.f32.mrb[4].mxu0 }
 0x414   :  { %v1046_v28 = vpop.f32.mrb[5].mxu0  ;;  %v387_v29 = vmul.f32 %v1044_v27, %v1044_v27 }
 0x415   :  { %v384_v30 = vadd.f32 %v1046_v28, %v1044_v27  ;;  %v388_v31 = vmul.f32 %v1046_v28, %v1046_v28 }
 0x417   :  { %v381_v32 = vpop.f32.mrb[6].mxu0  ;;  %v389_v58 = vadd.f32 %v388_v31, %v387_v29 }
 0x418   :  { %v382_v33 = vpop.f32.mrb[7].mxu0 }
 0x41b   :  { %v597_v34 = vpop.f32.mrb[8].mxu0 }
 0x41c   :  { %v599_v35 = vpop.f32.mrb[9].mxu0  ;;  %v614_v36 = vmul.f32 %v597_v34, %v597_v34 }
 0x41d   :  { %v608_v60 = vadd.f32 %v599_v35, %v597_v34  ;;  %v615_v37 = vmul.f32 %v599_v35, %v599_v35 }
 0x41f   :  { %609 = vadd.xlane.f32.xlu0 %v608_v60  ;;  %v603_v38 = vpop.f32.mrb[10].mxu0  ;;  %v618_v39 = vadd.f32 %v615_v37, %v614_v36 }
 0x420   :  { %v605_v40 = vpop.f32.mrb[11].mxu0  ;;  %v616_v41 = vmul.f32 %v603_v38, %v603_v38 }
 0x421   :  { %v617_v42 = vmul.f32 %v605_v40, %v605_v40  ;;  %v611_v43 = vadd.f32 %v605_v40, %v603_v38 }
 0x423   :  { %619 = vadd.xlane.f32.xlu0 %v618_v39  ;;  %612 = vadd.xlane.f32.xlu1 %v611_v43  ;;  %v621_v44 = vadd.f32 %v617_v42, %v616_v41 }
 0x427   :  { %385 = vadd.xlane.f32.xlu0 %v384_v30  ;;  %622 = vadd.xlane.f32.xlu1 %v621_v44 }
 0x42b   :  { %390 = vadd.xlane.f32.xlu0 %v389_v58 }
 0x4ac   :  { %v610_v45 = vpop.xlane.xlu0 %609 }
 0x4ad   :  { %v624_v46 = vmul.f32 0.00390625, %v610_v45 }
 0x4af   :  { %v628_v49 = vmul.f32 %v624_v46, %v624_v46  ;;  %v634_v61 = vsub.f32 %v597_v34, %v624_v46  ;;  %v635_v62 = vsub.f32 %v599_v35, %v624_v46 }
 0x4b0   :  { %v620_v47 = vpop.xlane.xlu0 %619  ;;  %v613_v48 = vpop.xlane.xlu1 %612 }
 0x4b1   :  { %v626_v50 = vmul.f32 0.00390625, %v620_v47  ;;  %v625_v51 = vmul.f32 0.00390625, %v613_v48 }
 0x4b3   :  { %v630_v52 = vsub.f32 %v626_v50, %v628_v49  ;;  %v629_v57 = vmul.f32 %v625_v51, %v625_v51  ;;  %v636_v16 = vsub.f32 %v603_v38, %v625_v51  ;;  %v637_v3 = vsub.f32 %v605_v40, %v625_v51 }
 0x4b4   :  { %v386_v53 = vpop.xlane.xlu0 %385  ;;  %v623_v54 = vpop.xlane.xlu1 %622 }
 0x4b5   :  { %v632_v55 = vmax.f32 %v630_v52, 0.0  ;;  %v392_v56 = vmul.f32 0.00390625, %v386_v53  ;;  %v627_v59 = vmul.f32 0.00390625, %v623_v54 }
 0x4b7   :  { %v638_v63 = vadd.f32 1e-05, %v632_v55  ;;  %v631_v1 = vsub.f32 %v627_v59, %v629_v57  ;;  %v394_v6 = vmul.f32 %v392_v56, %v392_v56  ;;  %v397_v23 = vsub.f32 %v1044_v27, %v392_v56 }
 0x4b8   :  { %v391_v2 = vpop.xlane.xlu0 %390  ;;  %v398_v9 = vsub.f32 %v1046_v28, %v392_v56 }
 0x4b9   :  { %823 = vrsqrt.f32 %v638_v63  ;;  %v633_v4 = vmax.f32 %v631_v1, 0.0  ;;  %v393_v7 = vmul.f32 0.00390625, %v391_v2 }
 0x4bb   :  { %v639_v8 = vadd.f32 1e-05, %v633_v4  ;;  %v395_v10 = vsub.f32 %v393_v7, %v394_v6 }
 0x4bd   :  { %825 = vrsqrt.f32 %v639_v8  ;;  %v396_v12 = vmax.f32 %v395_v10, 0.0 }
 0x4bf   :  { %v399_v13 = vadd.f32 1e-05, %v396_v12 }
 0x4c1   :  { %827 = vrsqrt.f32 %v399_v13 }
 0x4c3   :  { %v824_v14 = vpop.eup %823 }
 0x4c4   :  { %v643_v5 = vmul.f32 %v824_v14, %v635_v62  ;;  %v642_v18 = vmul.f32 %v824_v14, %v634_v61 }
 0x4c6   :  { %v647_v11 = vmax.f32 %v643_v5, 0.0  ;;  %v646_v25 = vmax.f32 %v642_v18, 0.0 }
 0x4c7   :  { %v826_v19 = vpop.eup %825 }
 0x4c8   :  { %v645_v20 = vmul.f32 %v826_v19, %v637_v3  ;;  %v644_v22 = vmul.f32 %v826_v19, %v636_v16 }
 0x4ca   :  { %v649_v24 = vmax.f32 %v645_v20, 0.0  ;;  %v648_v17 = vmax.f32 %v644_v22, 0.0 }
 0x4cb   :  { %v828_v26 = vpop.eup %827 }
 0x4cc   :  { %v799_v29 = vpack.c.bf16 %v649_v24, %v647_v11  ;;  %v801_v30 = vpack.c.bf16 %v648_v17, %v646_v25  ;;  %v401_v31 = vmul.f32 %v828_v26, %v397_v23  ;;  %v402_v32 = vmul.f32 %v828_v26, %v398_v9 }
 0x4ce   :  { %800 = vmatprep.subr.bf16.mxu1 %v799_v29  ;;  %v403_v58 = vmax.f32 %v401_v31, 0.0  ;;  %v404_v33 = vmax.f32 %v402_v32, 0.0 }
 0x4cf   :  { %802 = vmatpush1.bf16.msra.mxu1 %v801_v30 }
 0x4d0   :  { %405 = vst [vmem:[#allocation7] sm:$0xff] %v403_v58  ;;  %406 = vst [vmem:[#allocation7 + $0x8] sm:$0xff] %v404_v33 }
 0x4d2   :  { %777 = vmatmul.mubr.msk.f32.vlgmr.msra.gmra.mrb[8].mxu1 %vm52_vm0, %v1029_v21 }
 0x4d3   :  { %720 = vmatprep.mubr.f32.mxu1 %v909_v0 }
 0x4d6   :  { %778 = vmatmul.mubr.msk.f32.gmra.mrb[10].mxu1 %vm52_vm0, %v1034_v15 }
 0x5a5   :  { %v716_v27 = vpop.f32.mrb[8].mxu1 }
 0x5a6   :  { %v718_v28 = vpop.f32.mrb[9].mxu1  ;;  %v728_v34 = vmul.f32 %v716_v27, %v716_v27 }
 0x5a7   :  { %v725_v35 = vadd.f32 %v718_v28, %v716_v27  ;;  %v729_v36 = vmul.f32 %v718_v28, %v718_v28 }
 0x5a9   :  { %726 = vadd.xlane.f32.xlu1 %v725_v35  ;;  %v730_v60 = vadd.f32 %v729_v36, %v728_v34  ;;  %v722_v37 = vpop.f32.mrb[10].mxu1 }
 0x5aa   :  { %v723_v38 = vpop.f32.mrb[11].mxu1 }
 0x5ad   :  { %731 = vadd.xlane.f32.xlu1 %v730_v60 }
 0x636   :  { %v727_v39 = vpop.xlane.xlu1 %726 }
 0x637   :  { %v733_v40 = vmul.f32 0.00390625, %v727_v39 }
 0x639   :  { %v735_v42 = vmul.f32 %v733_v40, %v733_v40  ;;  %v738_v15 = vsub.f32 %v716_v27, %v733_v40  ;;  %v739_v45 = vsub.f32 %v718_v28, %v733_v40 }
 0x63a   :  { %v732_v41 = vpop.xlane.xlu1 %731 }
 0x63b   :  { %v734_v21 = vmul.f32 0.00390625, %v732_v41 }
 0x63d   :  { %v736_v43 = vsub.f32 %v734_v21, %v735_v42 }
 0x63f   :  { %v737_v0 = vmax.f32 %v736_v43, 0.0 }
 0x641   :  { %v740_v44 = vadd.f32 1e-05, %v737_v0 }
 0x643   :  { %829 = vrsqrt.f32 %v740_v44 }
 0x64d   :  { %v830_v46 = vpop.eup %829 }
 0x64e   :  { %v742_v47 = vmul.f32 %v830_v46, %v738_v15  ;;  %v743_v48 = vmul.f32 %v830_v46, %v739_v45 }
 0x650   :  { %v744_v49 = vmax.f32 %v742_v47, 0.0  ;;  %v745_v50 = vmax.f32 %v743_v48, 0.0 }
 0x652   :  { %747 = vst [vmem:[#allocation7 + $0x10] sm:$0xff] %v744_v49  ;;  %748 = vst [vmem:[#allocation7 + $0x18] sm:$0xff] %v745_v50 }
 0x653   :  { %886 = shalt.err (!%p883_p6)
}
 0x654   :  { %s887_s12 = scalar_lea.hbm %s1078_s2, 512 }
 0x655   :  { %p888_p7 = scmp.ne.s32.totalorder %s1078_s2, %s887_s12  ;;  %p891_p8 = scmp.lt.u32.totalorder %s887_s12, %s1078_s2 }
 0x657   :  { %p893_p9 = pnand %p891_p8, %p888_p7 }
 0x659   :  { %896 = shalt.err (!%p893_p9)
}
 0x65a   :  { %760 = dma.vmem_to_hbm [thread:$0]  %s755_s8, 512, %s1078_s2, [#allocation4], %s904_s19, %s904_s19, %s905_s20  }
 0x65b   :  { %901 = dma.done.wait [#allocation4], 512  }
 0x65c   :  { %902 = vsyncadd [#allocation4], 4294966784 }
 0x65d   :  { %764 = vsyncpa [#allocation3], 1 }
 0x65e   :  { %765 = vsyncpa [#allocation6], 1 }
 0x65f   :  { %766 = vsyncpa [#allocation4], 1 }

</bundles_post_ra>
